<compile_context>
chip_gen: v7x
topology: tpu7x:2x2x1
jax: 0.10.0
libtpu: 0.0.40
codegen_flags: <defaults>
</compile_context>

<pallas_src>
import functools

import jax
import jax.numpy as jnp
from jax.experimental import pallas as pl
from jax.experimental.pallas import tpu as pltpu


# ------------------------------ helpers ----------------------------------- #

def _round_up(x, m):
    return ((x + m - 1) // m) * m


def _pad_axis(arr, axis, multiple):
    size = arr.shape[axis]
    pad = (-size) % multiple
    if pad == 0:
        return arr
    widths = [(0, 0)] * arr.ndim
    widths[axis] = (0, pad)
    return jnp.pad(arr, widths)


def _vmem_budget_bytes():
    """Device-aware VMEM budget (conservative default for 64 MiB parts)."""
    try:
        kind = jax.devices()[0].device_kind.lower()
    except Exception:
        kind = ""
    if ("v5" in kind) or ("v6" in kind):
        return 80 * 1024 * 1024      # v5e / v6e: 128 MiB physical VMEM
    return 40 * 1024 * 1024          # v7x (64 MiB physical) / unknown: be safe


# --------------------- fully fused path (small graphs) --------------------- #

def _fused_gcn_kernel(*refs, num_layers):
    """All GCN layers in one kernel; intermediates never leave VMEM/vregs."""
    a_ref, x_ref = refs[0], refs[1]
    w_refs = refs[2:2 + num_layers]
    b_refs = refs[2 + num_layers:2 + 2 * num_layers]
    out_refs = refs[2 + 2 * num_layers:]

    a = a_ref[...]
    h = x_ref[...]
    for l in range(num_layers):
        xw = jnp.dot(h, w_refs[l][...],
                     preferred_element_type=jnp.float32).astype(a.dtype)
        z = jnp.dot(a, xw, preferred_element_type=jnp.float32)
        z = z + b_refs[l][...].astype(jnp.float32)
        h = jnp.maximum(z, 0.0).astype(out_refs[l].dtype)
        out_refs[l][...] = h          # only the ReLU output is written


def _fused_forward(a_hat, x, weights, biases, vmem_budget):
    n = x.shape[0]
    num_layers = len(weights)
    cdtype = x.dtype
    in_specs = [pl.BlockSpec(a_hat.shape, lambda i: (0, 0)),
                pl.BlockSpec(x.shape, lambda i: (0, 0))]
    in_specs += [pl.BlockSpec(w.shape, lambda i: (0, 0)) for w in weights]
    in_specs += [pl.BlockSpec(b.shape, lambda i: (0, 0)) for b in biases]
    out_specs = [pl.BlockSpec((n, w.shape[1]), lambda i: (0, 0))
                 for w in weights]
    out_shape = tuple(jax.ShapeDtypeStruct((n, w.shape[1]), cdtype)
                      for w in weights)
    outs = pl.pallas_call(
        functools.partial(_fused_gcn_kernel, num_layers=num_layers),
        out_shape=out_shape,
        grid_spec=pltpu.PrefetchScalarGridSpec(
            num_scalar_prefetch=0,
            grid=(1,),
            in_specs=in_specs,
            out_specs=out_specs),
        compiler_params=pltpu.CompilerParams(
            dimension_semantics=("arbitrary",),
            vmem_limit_bytes=vmem_budget),
    )(a_hat, x, *weights, *biases)
    return list(outs)


# -------------------- tiled two-stage path (large graphs) ------------------ #

def _xw_kernel(x_ref, w_ref, o_ref):
    """Row tile of XW = H @ W (computed once per layer, not per A-row-tile)."""
    o_ref[...] = jnp.dot(x_ref[...], w_ref[...],
                         preferred_element_type=jnp.float32).astype(o_ref.dtype)


def _xw_matmul(h, w, vmem_budget):
    n_pad, fin = h.shape
    fout = w.shape[1]
    s = h.dtype.itemsize
    tmx = 128
    for cand in (1024, 512, 256, 128):
        if n_pad % cand:
            continue
        est = 2 * cand * fin * s + 2 * fin * fout * s + 2 * cand * fout * s
        if est <= 0.6 * vmem_budget:
            tmx = cand
            break
    return pl.pallas_call(
        _xw_kernel,
        out_shape=jax.ShapeDtypeStruct((n_pad, fout), h.dtype),
        grid_spec=pltpu.PrefetchScalarGridSpec(
            num_scalar_prefetch=0,
            grid=(n_pad // tmx,),
            in_specs=[pl.BlockSpec((tmx, fin), lambda i: (i, 0)),
                      pl.BlockSpec((fin, fout), lambda i: (0, 0))],
            out_specs=pl.BlockSpec((tmx, fout), lambda i: (i, 0))),
        compiler_params=pltpu.CompilerParams(
            dimension_semantics=("parallel",),
            vmem_limit_bytes=vmem_budget),
    )(h, w)


def _agg_relu_kernel(a_ref, xw_ref, b_ref, o_ref, acc_ref):
    """relu(A_tile @ XW + b) with K-tiled accumulation into an f32 scratch."""
    @pl.when(pl.program_id(1) == 0)
    def _init():
        acc_ref[...] = jnp.zeros_like(acc_ref)

    acc_ref[...] += jnp.dot(a_ref[...], xw_ref[...],
                            preferred_element_type=jnp.float32)

    @pl.when(pl.program_id(1) == pl.num_programs(1) - 1)
    def _finalize():
        h = acc_ref[...] + b_ref[...].astype(jnp.float32)
        o_ref[...] = jnp.maximum(h, 0.0).astype(o_ref.dtype)


def _agg_relu(a, xw, b, vmem_budget, tile_m=None, tile_k=None):
    n_pad = a.shape[0]
    fout = xw.shape[1]
    s = a.dtype.itemsize
    if tile_m is None or tile_k is None:
        tm_sel, tk_sel, done = 128, 128, False
        for tm_c in (1024, 512, 256, 128):
            if n_pad % tm_c:
                continue
            if tm_c > 128 and n_pad // tm_c < 2:
                continue   # keep >= 2 row tiles (v7x has 2 TensorCores/chip)
            for tk_c in (1024, 512, 256, 128):
                if n_pad % tk_c:
                    continue
                est = (2 * tm_c * tk_c * s       # A tile (double-buffered)
                       + 2 * tk_c * fout * s     # XW tile
                       + 2 * tm_c * fout * s     # output tile
                       + tm_c * fout * 4)        # f32 accumulator
                if est <= 0.7 * vmem_budget:
                    tm_sel, tk_sel, done = tm_c, tk_c, True
                    break
            if done:
                break
        tm = tile_m if tile_m is not None else tm_sel
        tk = tile_k if tile_k is not None else tk_sel
    else:
        tm, tk = tile_m, tile_k
    assert n_pad % tm == 0 and n_pad % tk == 0, "tiles must divide padded N"
    return pl.pallas_call(
        _agg_relu_kernel,
        out_shape=jax.ShapeDtypeStruct((n_pad, fout), a.dtype),
        grid_spec=pltpu.PrefetchScalarGridSpec(
            num_scalar_prefetch=0,
            grid=(n_pad // tm, n_pad // tk),
            in_specs=[pl.BlockSpec((tm, tk), lambda i, k: (i, k)),
                      pl.BlockSpec((tk, fout), lambda i, k: (k, 0)),
                      pl.BlockSpec((1, fout), lambda i, k: (0, 0))],
            out_specs=pl.BlockSpec((tm, fout), lambda i, k: (i, 0)),
            scratch_shapes=[pltpu.VMEM((tm, fout), jnp.float32)]),
        compiler_params=pltpu.CompilerParams(
            dimension_semantics=("parallel", "arbitrary"),
            vmem_limit_bytes=vmem_budget),
    )(a, xw, b)


# ------------------------------ forward ------------------------------------ #

def gcn_mgaev3_forward(x, a_hat, weights, biases, *, compute_dtype=None,
                       lane_multiple=128, force_tiled=False,
                       tile_m=None, tile_k=None):
    """GCN_mgaev3.forward: returns the list xx of per-layer ReLU outputs."""
    assert len(weights) == len(biases) and len(weights) >= 1
    n = x.shape[0]
    out_dims = [w.shape[1] for w in weights]

    if compute_dtype is not None:
        x = x.astype(compute_dtype)
        a_hat = a_hat.astype(compute_dtype)
        weights = [w.astype(compute_dtype) for w in weights]
    biases = [b.astype(jnp.float32) for b in biases]
    itemsize = x.dtype.itemsize

    # Zero-pad feature dims to lane multiples -> dense (unmasked) vector stores.
    x_p = _pad_axis(x, 1, lane_multiple)
    ws_p = [_pad_axis(_pad_axis(w, 0, lane_multiple), 1, lane_multiple)
            for w in weights]
    bs_p = [_pad_axis(b.reshape(1, -1), 1, lane_multiple) for b in biases]

    budget = _vmem_budget_bytes()

    # ---- fully fused single-kernel path (small graphs) ----
    fused_bytes = ((a_hat.size + x_p.size
                    + sum(w.size for w in ws_p)
                    + sum(n * w.shape[1] for w in ws_p)) * itemsize
                   + sum(b.size for b in bs_p) * 4
                   + 4 * n * max(w.shape[1] for w in ws_p) * 4)
    if (not force_tiled) and fused_bytes <= 6 * 1024 * 1024:
        outs = _fused_forward(a_hat, x_p, ws_p, bs_p, budget)
        return [o[:, :f] for o, f in zip(outs, out_dims)]

    # ---- tiled per-layer path (large graphs) ----
    n_pad = _round_up(n, 128)
    a_p = jnp.pad(a_hat, ((0, n_pad - n), (0, n_pad - n)))
    h = jnp.pad(x_p, ((0, n_pad - n), (0, 0)))
    outs = []
    for w_p, b_p in zip(ws_p, bs_p):
        xw = _xw_matmul(h, w_p, budget)          # X @ W computed ONCE per layer
        h = _agg_relu(a_p, xw, b_p, budget, tile_m, tile_k)
        outs.append(h)
    return [o[:n, :f] for o, f in zip(outs, out_dims)]


# --------------------------- reference (plain JAX) -------------------------- #

def gcn_forward_ref(x, a_hat, weights, biases, compute_dtype=None):
    if compute_dtype is not None:
        x = x.astype(compute_dtype)
        a_hat = a_hat.astype(compute_dtype)
        weights = [w.astype(compute_dtype) for w in weights]
    cdtype = x.dtype
    h = x
    outs = []
    for w, b in zip(weights, biases):
        xw = jnp.dot(h, w, preferred_element_type=jnp.float32).astype(cdtype)
        z = jnp.dot(a_hat, xw, preferred_element_type=jnp.float32)
        z = z + b.astype(jnp.float32)[None, :]
        h = jnp.maximum(z, 0.0).astype(cdtype)
        outs.append(h)
    return outs


# ------------------------------ test harness -------------------------------- #

def _glorot(key, fan_in, fan_out, dtype=jnp.float32):
    limit = float(jnp.sqrt(6.0 / (fan_in + fan_out)))
    return jax.random.uniform(key, (fan_in, fan_out), dtype, -limit, limit)


def _normalized_adjacency(key, n, edge_p=0.2, dtype=jnp.float32):
    """Dense symmetric random graph -> D^{-1/2} A D^{-1/2} (no self loops)."""
    raw = jax.random.uniform(key, (n, n))
    a = (raw < edge_p).astype(dtype)
    a = jnp.maximum(a, a.T)
    a = a * (1.0 - jnp.eye(n, dtype=dtype))      # add_self_loops=False
    deg = jnp.sum(a, axis=1)
    d_inv_sqrt = jnp.where(deg > 0, 1.0 / jnp.sqrt(deg), 0.0)
    return (a * d_inv_sqrt[:, None]) * d_inv_sqrt[None, :]


if __name__ == "__main__":
    key = jax.random.PRNGKey(0)

    def build_problem(key, n, in_ch, hid, out_ch, num_layers, edge_p=0.2):
        k_x, k_a, k_wb = jax.random.split(key, 3)
        x = jax.random.normal(k_x, (n, in_ch), dtype=jnp.float32)
        a_hat = _normalized_adjacency(k_a, n, edge_p)
        weights, biases = [], []
        wkeys = jax.random.split(k_wb, 2 * num_layers)
        for l in range(num_layers):
            fin = in_ch if l == 0 else hid
            fout = out_ch if l == num_layers - 1 else hid
            weights.append(_glorot(wkeys[2 * l], fin, fout))
            biases.append(0.1 * jax.random.normal(wkeys[2 * l + 1], (fout,),
                                                  dtype=jnp.float32))
        return x, a_hat, weights, biases

    def check(outs, refs, atol, rtol, tag):
        for i, (o, r) in enumerate(zip(outs, refs)):
            ok = jnp.allclose(o.astype(jnp.float32), r.astype(jnp.float32),
                              atol=atol, rtol=rtol)
            assert bool(ok), f"{tag}: layer {i} output mismatch"

    k1, k2 = jax.random.split(key)

    # Test 1: small graph -> fully fused single pallas_call, f32.
    x1, a1, ws1, bs1 = build_problem(k1, n=64, in_ch=16, hid=32, out_ch=16,
                                     num_layers=3)
    outs1 = gcn_mgaev3_forward(x1, a1, ws1, bs1)
    jax.block_until_ready(outs1)
    refs1 = gcn_forward_ref(x1, a1, ws1, bs1)
    check(outs1, refs1, atol=1e-4, rtol=1e-4, tag="fused-f32")

    # Test 2: larger graph -> tiled two-stage path, bf16 compute, K-tiled acc.
    x2, a2, ws2, bs2 = build_problem(k2, n=256, in_ch=64, hid=128, out_ch=64,
                                     num_layers=3)
    outs2 = gcn_mgaev3_forward(x2, a2, ws2, bs2,
                               compute_dtype=jnp.bfloat16,
                               force_tiled=True, tile_m=128, tile_k=128)
    jax.block_until_ready(outs2)
    refs2 = gcn_forward_ref(x2, a2, ws2, bs2, compute_dtype=jnp.bfloat16)
    check(outs2, refs2, atol=1e-2, rtol=1e-2, tag="tiled-bf16")

    print("KERNEL_OK")
</pallas_src>

<mosaic_0001>
module attributes {stable_mosaic.version = 11 : i64} {
  func.func @_fused_gcn_kernel(%arg0: i32, %arg1: memref<64x64xf32, #tpu.memory_space<vmem>>, %arg2: memref<64x128xf32, #tpu.memory_space<vmem>>, %arg3: memref<128x128xf32, #tpu.memory_space<vmem>>, %arg4: memref<128x128xf32, #tpu.memory_space<vmem>>, %arg5: memref<128x128xf32, #tpu.memory_space<vmem>>, %arg6: memref<1x128xf32, #tpu.memory_space<vmem>>, %arg7: memref<1x128xf32, #tpu.memory_space<vmem>>, %arg8: memref<1x128xf32, #tpu.memory_space<vmem>>, %arg9: memref<64x128xf32, #tpu.memory_space<vmem>>, %arg10: memref<64x128xf32, #tpu.memory_space<vmem>>, %arg11: memref<64x128xf32, #tpu.memory_space<vmem>>) attributes {dimension_semantics = [#tpu.dimension_semantics<arbitrary>], iteration_bounds = array<i64: 1>, scalar_prefetch = 0 : i64, scratch_operands = 0 : i64, tpu.core_type = #tpu.core_type<tc>, window_params = [{pipeline_mode = #tpu.pipeline_mode<synchronous>, transform_indices = @transform_0, window_bounds = array<i64: 64, 64>}, {pipeline_mode = #tpu.pipeline_mode<synchronous>, transform_indices = @transform_1, window_bounds = array<i64: 64, 128>}, {pipeline_mode = #tpu.pipeline_mode<synchronous>, transform_indices = @transform_2, window_bounds = array<i64: 128, 128>}, {pipeline_mode = #tpu.pipeline_mode<synchronous>, transform_indices = @transform_3, window_bounds = array<i64: 128, 128>}, {pipeline_mode = #tpu.pipeline_mode<synchronous>, transform_indices = @transform_4, window_bounds = array<i64: 128, 128>}, {pipeline_mode = #tpu.pipeline_mode<synchronous>, transform_indices = @transform_5, window_bounds = array<i64: 1, 128>}, {pipeline_mode = #tpu.pipeline_mode<synchronous>, transform_indices = @transform_6, window_bounds = array<i64: 1, 128>}, {pipeline_mode = #tpu.pipeline_mode<synchronous>, transform_indices = @transform_7, window_bounds = array<i64: 1, 128>}, {pipeline_mode = #tpu.pipeline_mode<synchronous>, transform_indices = @transform_8, window_bounds = array<i64: 64, 128>}, {pipeline_mode = #tpu.pipeline_mode<synchronous>, transform_indices = @transform_9, window_bounds = array<i64: 64, 128>}, {pipeline_mode = #tpu.pipeline_mode<synchronous>, transform_indices = @transform_10, window_bounds = array<i64: 64, 128>}]} {
    %c0 = arith.constant 0 : index
    %c0_0 = arith.constant 0 : index
    %0 = vector.load %arg1[%c0, %c0_0] : memref<64x64xf32, #tpu.memory_space<vmem>>, vector<64x64xf32>
    %c0_1 = arith.constant 0 : index
    %c0_2 = arith.constant 0 : index
    %1 = vector.load %arg2[%c0_1, %c0_2] : memref<64x128xf32, #tpu.memory_space<vmem>>, vector<64x128xf32>
    %c0_3 = arith.constant 0 : index
    %c0_4 = arith.constant 0 : index
    %2 = vector.load %arg3[%c0_3, %c0_4] : memref<128x128xf32, #tpu.memory_space<vmem>>, vector<128x128xf32>
    %cst = arith.constant dense<0.000000e+00> : vector<64x128xf32>
    %3 = tpu.matmul %1, %2, %cst {dimension_numbers = #tpu.dot_dimension_numbers<[1], [0], [0], [1], [0, 0, 1, 1], [], []>} : vector<64x128xf32>, vector<128x128xf32>, vector<64x128xf32> -> vector<64x128xf32>
    %cst_5 = arith.constant dense<0.000000e+00> : vector<64x128xf32>
    %4 = tpu.matmul %0, %3, %cst_5 {dimension_numbers = #tpu.dot_dimension_numbers<[1], [0], [0], [1], [0, 0, 1, 1], [], []>} : vector<64x64xf32>, vector<64x128xf32>, vector<64x128xf32> -> vector<64x128xf32>
    %c0_6 = arith.constant 0 : index
    %c0_7 = arith.constant 0 : index
    %5 = vector.load %arg6[%c0_6, %c0_7] : memref<1x128xf32, #tpu.memory_space<vmem>>, vector<1x128xf32>
    %6 = vector.broadcast %5 : vector<1x128xf32> to vector<64x128xf32>
    %7 = arith.addf %4, %6 : vector<64x128xf32>
    %cst_8 = arith.constant 0.000000e+00 : f32
    %8 = vector.broadcast %cst_8 : f32 to vector<64x128xf32>
    %9 = arith.maximumf %7, %8 : vector<64x128xf32>
    %c0_9 = arith.constant 0 : index
    %c0_10 = arith.constant 0 : index
    %10 = vector.load %arg9[%c0_9, %c0_10] : memref<64x128xf32, #tpu.memory_space<vmem>>, vector<64x128xf32>
    tpu.vector_store %arg9[%c0_9, %c0_10], %9 {strides = array<i32>} : memref<64x128xf32, #tpu.memory_space<vmem>>, vector<64x128xf32>,
    %c0_11 = arith.constant 0 : index
    %c0_12 = arith.constant 0 : index
    %11 = vector.load %arg4[%c0_11, %c0_12] : memref<128x128xf32, #tpu.memory_space<vmem>>, vector<128x128xf32>
    %cst_13 = arith.constant dense<0.000000e+00> : vector<64x128xf32>
    %12 = tpu.matmul %9, %11, %cst_13 {dimension_numbers = #tpu.dot_dimension_numbers<[1], [0], [0], [1], [0, 0, 1, 1], [], []>} : vector<64x128xf32>, vector<128x128xf32>, vector<64x128xf32> -> vector<64x128xf32>
    %cst_14 = arith.constant dense<0.000000e+00> : vector<64x128xf32>
    %13 = tpu.matmul %0, %12, %cst_14 {dimension_numbers = #tpu.dot_dimension_numbers<[1], [0], [0], [1], [0, 0, 1, 1], [], []>} : vector<64x64xf32>, vector<64x128xf32>, vector<64x128xf32> -> vector<64x128xf32>
    %c0_15 = arith.constant 0 : index
    %c0_16 = arith.constant 0 : index
    %14 = vector.load %arg7[%c0_15, %c0_16] : memref<1x128xf32, #tpu.memory_space<vmem>>, vector<1x128xf32>
    %15 = vector.broadcast %14 : vector<1x128xf32> to vector<64x128xf32>
    %16 = arith.addf %13, %15 : vector<64x128xf32>
    %cst_17 = arith.constant 0.000000e+00 : f32
    %17 = vector.broadcast %cst_17 : f32 to vector<64x128xf32>
    %18 = arith.maximumf %16, %17 : vector<64x128xf32>
    %c0_18 = arith.constant 0 : index
    %c0_19 = arith.constant 0 : index
    %19 = vector.load %arg10[%c0_18, %c0_19] : memref<64x128xf32, #tpu.memory_space<vmem>>, vector<64x128xf32>
    tpu.vector_store %arg10[%c0_18, %c0_19], %18 {strides = array<i32>} : memref<64x128xf32, #tpu.memory_space<vmem>>, vector<64x128xf32>,
    %c0_20 = arith.constant 0 : index
    %c0_21 = arith.constant 0 : index
    %20 = vector.load %arg5[%c0_20, %c0_21] : memref<128x128xf32, #tpu.memory_space<vmem>>, vector<128x128xf32>
    %cst_22 = arith.constant dense<0.000000e+00> : vector<64x128xf32>
    %21 = tpu.matmul %18, %20, %cst_22 {dimension_numbers = #tpu.dot_dimension_numbers<[1], [0], [0], [1], [0, 0, 1, 1], [], []>} : vector<64x128xf32>, vector<128x128xf32>, vector<64x128xf32> -> vector<64x128xf32>
    %cst_23 = arith.constant dense<0.000000e+00> : vector<64x128xf32>
    %22 = tpu.matmul %0, %21, %cst_23 {dimension_numbers = #tpu.dot_dimension_numbers<[1], [0], [0], [1], [0, 0, 1, 1], [], []>} : vector<64x64xf32>, vector<64x128xf32>, vector<64x128xf32> -> vector<64x128xf32>
    %c0_24 = arith.constant 0 : index
    %c0_25 = arith.constant 0 : index
    %23 = vector.load %arg8[%c0_24, %c0_25] : memref<1x128xf32, #tpu.memory_space<vmem>>, vector<1x128xf32>
    %24 = vector.broadcast %23 : vector<1x128xf32> to vector<64x128xf32>
    %25 = arith.addf %22, %24 : vector<64x128xf32>
    %cst_26 = arith.constant 0.000000e+00 : f32
    %26 = vector.broadcast %cst_26 : f32 to vector<64x128xf32>
    %27 = arith.maximumf %25, %26 : vector<64x128xf32>
    %c0_27 = arith.constant 0 : index
    %c0_28 = arith.constant 0 : index
    %28 = vector.load %arg11[%c0_27, %c0_28] : memref<64x128xf32, #tpu.memory_space<vmem>>, vector<64x128xf32>
    tpu.vector_store %arg11[%c0_27, %c0_28], %27 {strides = array<i32>} : memref<64x128xf32, #tpu.memory_space<vmem>>, vector<64x128xf32>,
    return
  }
  func.func @transform_0(%arg0: i32) -> (i32, i32) {
    %c0_i32 = arith.constant 0 : i32
    %c0_i32_0 = arith.constant 0 : i32
    %c0_i32_1 = arith.constant 0 : i32
    return %c0_i32, %c0_i32_0 : i32, i32
  }
  func.func @transform_1(%arg0: i32) -> (i32, i32) {
    %c0_i32 = arith.constant 0 : i32
    %c0_i32_0 = arith.constant 0 : i32
    %c0_i32_1 = arith.constant 0 : i32
    return %c0_i32, %c0_i32_0 : i32, i32
  }
  func.func @transform_2(%arg0: i32) -> (i32, i32) {
    %c0_i32 = arith.constant 0 : i32
    %c0_i32_0 = arith.constant 0 : i32
    %c0_i32_1 = arith.constant 0 : i32
    return %c0_i32, %c0_i32_0 : i32, i32
  }
  func.func @transform_3(%arg0: i32) -> (i32, i32) {
    %c0_i32 = arith.constant 0 : i32
    %c0_i32_0 = arith.constant 0 : i32
    %c0_i32_1 = arith.constant 0 : i32
    return %c0_i32, %c0_i32_0 : i32, i32
  }
  func.func @transform_4(%arg0: i32) -> (i32, i32) {
    %c0_i32 = arith.constant 0 : i32
    %c0_i32_0 = arith.constant 0 : i32
    %c0_i32_1 = arith.constant 0 : i32
    return %c0_i32, %c0_i32_0 : i32, i32
  }
  func.func @transform_5(%arg0: i32) -> (i32, i32) {
    %c0_i32 = arith.constant 0 : i32
    %c0_i32_0 = arith.constant 0 : i32
    %c0_i32_1 = arith.constant 0 : i32
    return %c0_i32, %c0_i32_0 : i32, i32
  }
  func.func @transform_6(%arg0: i32) -> (i32, i32) {
    %c0_i32 = arith.constant 0 : i32
    %c0_i32_0 = arith.constant 0 : i32
    %c0_i32_1 = arith.constant 0 : i32
    return %c0_i32, %c0_i32_0 : i32, i32
  }
  func.func @transform_7(%arg0: i32) -> (i32, i32) {
    %c0_i32 = arith.constant 0 : i32
    %c0_i32_0 = arith.constant 0 : i32
    %c0_i32_1 = arith.constant 0 : i32
    return %c0_i32, %c0_i32_0 : i32, i32
  }
  func.func @transform_8(%arg0: i32) -> (i32, i32) {
    %c0_i32 = arith.constant 0 : i32
    %c0_i32_0 = arith.constant 0 : i32
    %c0_i32_1 = arith.constant 0 : i32
    return %c0_i32, %c0_i32_0 : i32, i32
  }
  func.func @transform_9(%arg0: i32) -> (i32, i32) {
    %c0_i32 = arith.constant 0 : i32
    %c0_i32_0 = arith.constant 0 : i32
    %c0_i32_1 = arith.constant 0 : i32
    return %c0_i32, %c0_i32_0 : i32, i32
  }
  func.func @transform_10(%arg0: i32) -> (i32, i32) {
    %c0_i32 = arith.constant 0 : i32
    %c0_i32_0 = arith.constant 0 : i32
    %c0_i32_1 = arith.constant 0 : i32
    return %c0_i32, %c0_i32_0 : i32, i32
  }
}

</mosaic_0001>

<bundles_post_ra>
// kernel: tpu_custom_call.1
= control target key start
LH: loop header
LB: loop body
LE: loop exit
PB: predicated region body
PF: predicated region fallthrough
CT: control target
= control target key end

     0   :  { %16 = vsyncpa [#allocation3], 0  ;;  %s1915_s0 = inlined_call_operand.hbm [shape: f32[64,64], index: 0, kind: input, shape index: {}]   ;;  %s1916_s1 = inlined_call_operand.hbm [shape: f32[64,128], index: 1, kind: input, shape index: {}]   ;;  %s1917_s2 = inlined_call_operand.hbm [shape: f32[128,128], index: 2, kind: input, shape index: {}]   ;;  %s1918_s3 = inlined_call_operand.hbm [shape: f32[128,128], index: 3, kind: input, shape index: {}]   ;;  %s1919_s4 = inlined_call_operand.hbm [shape: f32[128,128], index: 4, kind: input, shape index: {}]   ;;  %s1920_s5 = inlined_call_operand.vmem [shape: f32[1,128], index: 5, kind: input, shape index: {}]   ;;  %s1921_s6 = inlined_call_operand.vmem [shape: f32[1,128], index: 6, kind: input, shape index: {}]   ;;  %s1922_s7 = inlined_call_operand.vmem [shape: f32[1,128], index: 7, kind: input, shape index: {}]   ;;  %s1923_s8 = inlined_call_operand.hbm [shape: f32[64,128], index: 8, kind: output, shape index: {0}]   ;;  %s1924_s9 = inlined_call_operand.hbm [shape: f32[64,128], index: 9, kind: output, shape index: {1}]   ;;  %s1925_s10 = inlined_call_operand.hbm [shape: f32[64,128], index: 10, kind: output, shape index: {2}]  }
   0x1   :  { %17 = vsyncpa [#allocation6], 0 }
   0x2   :  { %18 = vsyncpa [#allocation9], 0 }
   0x3   :  { %19 = vsyncpa [#allocation4], 0 }
   0x4   :  { %20 = vsyncpa [#allocation13], 0  ;;  %s1643_s13 = smov [#allocation5]   ;;  %s1644_s15 = smov [#allocation8]  }
   0x5   :  { %s38_s14 = sshll.u32 %s1643_s13, 4  ;;  %s62_s16 = sshll.u32 %s1644_s15, 4  ;;  %s39_s14 = int_to_ptr.vmem [resolvable:$true] %s38_s14  ;;  %s1708_s16 = int_to_ptr.vmem [resolvable:$true] %s62_s16 }
   0x6   :  { %s1457_s19 = scalar_lea.hbm %s1916_s1, 1024 }
   0x7   :  { %p1458_p0 = scmp.ne.s32.totalorder %s1916_s1, %s1457_s19  ;;  %p1461_p1 = scmp.lt.u32.totalorder %s1457_s19, %s1916_s1 }
   0x9   :  { %p1463_p2 = pnand %p1461_p1, %p1458_p0 }
   0xb   :  { %1466 = shalt.err (!%p1463_p2)
}
   0xc   :  { %s1467_s24 = scalar_lea.vmem %s39_s14, 1024  ;;  %p1472_p4 = scmp.lt.s32.totalorder %s39_s14, %s39_s14 }
   0xd   :  { %p1468_p3 = scmp.ne.s32.totalorder %s39_s14, %s1467_s24  ;;  %p1473_p5 = scmp.lt.s32.totalorder %s1467_s24, %s1467_s24 }
   0xf   :  { %p1474_p6 = por %p1473_p5, %p1472_p4 }
  0x11   :  { %p1475_p7 = pnand %p1474_p6, %p1468_p3 }
  0x13   :  { %1478 = shalt.err (!%p1475_p7)
}
  0x14   :  { %s1645_s25 = smov 128   ;;  %s1646_s26 = smov 8  }
  0x15   :  { %44 = dma.hbm_to_vmem [thread:$0]  %s1916_s1, 1024, %s39_s14, [#allocation6], %s1645_s25, %s1645_s25, %s1646_s26  }
  0x16   :  { %s1479_s11 = scalar_lea.hbm %s1918_s3, 2048 }
  0x17   :  { %p1480_p8 = scmp.ne.s32.totalorder %s1918_s3, %s1479_s11  ;;  %p1483_p9 = scmp.lt.u32.totalorder %s1479_s11, %s1918_s3 }
  0x19   :  { %p1485_p10 = pnand %p1483_p9, %p1480_p8 }
  0x1b   :  { %1488 = shalt.err (!%p1485_p10)
}
  0x1c   :  { %s1489_s18 = scalar_lea.vmem %s1708_s16, 2048  ;;  %p1494_p12 = scmp.lt.s32.totalorder %s1708_s16, %s1708_s16 }
  0x1d   :  { %p1490_p11 = scmp.ne.s32.totalorder %s1708_s16, %s1489_s18  ;;  %p1495_p13 = scmp.lt.s32.totalorder %s1489_s18, %s1489_s18 }
  0x1f   :  { %p1496_p0 = por %p1495_p13, %p1494_p12 }
  0x21   :  { %p1497_p1 = pnand %p1496_p0, %p1490_p11 }
  0x23   :  { %1500 = shalt.err (!%p1497_p1)
}
  0x24   :  { %68 = dma.hbm_to_vmem [thread:$0]  %s1918_s3, 2048, %s1708_s16, [#allocation9], %s1645_s25, %s1645_s25, %s1646_s26  }
  0x25   :  { %s1647_s19 = smov [#allocation2]   ;;  %s1648_s21 = smov [#allocation7]  }
  0x26   :  { %s26_s20 = sshll.u32 %s1647_s19, 4  ;;  %s50_s22 = sshll.u32 %s1648_s21, 4  ;;  %s27_s20 = int_to_ptr.vmem [resolvable:$true] %s26_s20  ;;  %s1745_s22 = int_to_ptr.vmem [resolvable:$true] %s50_s22 }
  0x27   :  { %s1501_s27 = scalar_lea.hbm %s1915_s0, 1024 }
  0x28   :  { %p1502_p2 = scmp.ne.s32.totalorder %s1915_s0, %s1501_s27  ;;  %p1505_p3 = scmp.lt.u32.totalorder %s1501_s27, %s1915_s0 }
  0x2a   :  { %p1507_p4 = pnand %p1505_p3, %p1502_p2 }
  0x2c   :  { %1510 = shalt.err (!%p1507_p4)
}
  0x2d   :  { %s1511_s3 = scalar_lea.vmem %s27_s20, 1024  ;;  %p1516_p6 = scmp.lt.s32.totalorder %s27_s20, %s27_s20 }
  0x2e   :  { %p1512_p5 = scmp.ne.s32.totalorder %s27_s20, %s1511_s3  ;;  %p1517_p7 = scmp.lt.s32.totalorder %s1511_s3, %s1511_s3 }
  0x30   :  { %p1518_p8 = por %p1517_p7, %p1516_p6 }
  0x32   :  { %p1519_p9 = pnand %p1518_p8, %p1512_p5 }
  0x34   :  { %1522 = shalt.err (!%p1519_p9)
}
  0x35   :  { %32 = dma.hbm_to_vmem [thread:$0]  %s1915_s0, 1024, %s27_s20, [#allocation3], %s1645_s25, %s1645_s25, %s1646_s26  }
  0x36   :  { %s1523_s17 = scalar_lea.hbm %s1917_s2, 2048 }
  0x37   :  { %p1524_p10 = scmp.ne.s32.totalorder %s1917_s2, %s1523_s17  ;;  %p1527_p11 = scmp.lt.u32.totalorder %s1523_s17, %s1917_s2 }
  0x39   :  { %p1529_p12 = pnand %p1527_p11, %p1524_p10 }
  0x3b   :  { %1532 = shalt.err (!%p1529_p12)
}
  0x3c   :  { %s1533_s21 = scalar_lea.vmem %s1745_s22, 2048  ;;  %p1538_p0 = scmp.lt.s32.totalorder %s1745_s22, %s1745_s22 }
  0x3d   :  { %p1534_p13 = scmp.ne.s32.totalorder %s1745_s22, %s1533_s21  ;;  %p1539_p1 = scmp.lt.s32.totalorder %s1533_s21, %s1533_s21 }
  0x3f   :  { %p1540_p2 = por %p1539_p1, %p1538_p0 }
  0x41   :  { %p1541_p3 = pnand %p1540_p2, %p1534_p13 }
  0x43   :  { %1544 = shalt.err (!%p1541_p3)
}
  0x44   :  { %56 = dma.hbm_to_vmem [thread:$0]  %s1917_s2, 2048, %s1745_s22, [#allocation6], %s1645_s25, %s1645_s25, %s1646_s26  }
  0x45   :  { %s1649_s23 = smov [#allocation10]   ;;  %s1545_s29 = scalar_lea.hbm %s1919_s4, 2048 }
  0x46   :  { %s74_s24 = sshll.u32 %s1649_s23, 4  ;;  %p1546_p4 = scmp.ne.s32.totalorder %s1919_s4, %s1545_s29  ;;  %s75_s24 = int_to_ptr.vmem [resolvable:$true] %s74_s24 }
  0x47   :  { %p1549_p5 = scmp.lt.u32.totalorder %s1545_s29, %s1919_s4 }
  0x49   :  { %p1551_p6 = pnand %p1549_p5, %p1546_p4 }
  0x4b   :  { %1554 = shalt.err (!%p1551_p6)
}
  0x4c   :  { %s1555_s12 = scalar_lea.vmem %s75_s24, 2048  ;;  %p1560_p8 = scmp.lt.s32.totalorder %s75_s24, %s75_s24 }
  0x4d   :  { %p1556_p7 = scmp.ne.s32.totalorder %s75_s24, %s1555_s12  ;;  %p1561_p9 = scmp.lt.s32.totalorder %s1555_s12, %s1555_s12 }
  0x4f   :  { %p1562_p10 = por %p1561_p9, %p1560_p8 }
  0x51   :  { %p1563_p11 = pnand %p1562_p10, %p1556_p7 }
  0x53   :  { %1566 = shalt.err (!%p1563_p11)
}
  0x54   :  { %80 = dma.hbm_to_vmem [thread:$0]  %s1919_s4, 2048, %s75_s24, [#allocation9], %s1645_s25, %s1645_s25, %s1646_s26  }
  0x55   :  { %1633 = dma.done.wait [#allocation3], 1024  }
  0x56   :  { %1634 = vsyncadd [#allocation3], 4294966272 }
  0x57   :  { %1635 = dma.done.wait [#allocation6], 3072  }
  0x58   :  { %1636 = vsyncadd [#allocation6], 4294964224 }
  0x59   :  { %1637 = dma.done.wait [#allocation9], 4096  }
  0x5a   :  { %1638 = vsyncadd [#allocation9], 4294963200  ;;  %v118_v0 = vld [vmem:[#allocation7] sm:$0xff]  ;;  %v119_v1 = vld [vmem:[#allocation7 + $0x8] sm:$0xff]  ;;  %vm246_vm0 = vcmask 523264   ;;  %s1651_s18 = smov [#allocation11]  }
  0x5b   :  { %v120_v2 = vld [vmem:[#allocation7 + $0x10] sm:$0xff]  ;;  %v1303_v3 = vpack.c.bf16 %v119_v1, %v118_v0  ;;  %v121_v4 = vld [vmem:[#allocation7 + $0x18] sm:$0xff]  ;;  %v122_v6 = vld [vmem:[#allocation7 + $0x20] sm:$0xff]  ;;  %s895_s1 = sshll.u32 %s1651_s18, 4  ;;  %s896_s1 = int_to_ptr.vmem [resolvable:$true] %s895_s1 }
  0x5c   :  { %v1307_v5 = vpack.c.bf16 %v121_v4, %v120_v2  ;;  %v123_v7 = vld [vmem:[#allocation7 + $0x28] sm:$0xff]  ;;  %v110_v9 = vld [vmem:[#allocation5] sm:$0xff]  ;;  %v124_v10 = vld [vmem:[#allocation7 + $0x30] sm:$0xff] }
  0x5d   :  { %1304 = vmatprep.subr.bf16.mxu0 %v1303_v3  ;;  %v1311_v8 = vpack.c.bf16 %v123_v7, %v122_v6  ;;  %v125_v11 = vld [vmem:[#allocation7 + $0x38] sm:$0xff]  ;;  %1119 = vmatprep.mubr.f32.mxu0 %v110_v9  ;;  %v126_v13 = vld [vmem:[#allocation7 + $0x40] sm:$0xff]  ;;  %v127_v14 = vld [vmem:[#allocation7 + $0x48] sm:$0xff] }
  0x5e   :  { %1306 = vmatpush3.bf16.msra.mxu0 %v1303_v3  ;;  %v1315_v12 = vpack.c.bf16 %v125_v11, %v124_v10  ;;  %v1319_v15 = vpack.c.bf16 %v127_v14, %v126_v13  ;;  %v128_v16 = vld [vmem:[#allocation7 + $0x50] sm:$0xff]  ;;  %v129_v17 = vld [vmem:[#allocation7 + $0x58] sm:$0xff]  ;;  %v130_v19 = vld [vmem:[#allocation7 + $0x60] sm:$0xff] }
  0x5f   :  { %1308 = vmatprep.subr.bf16.mxu0 %v1307_v5  ;;  %v1323_v18 = vpack.c.bf16 %v129_v17, %v128_v16  ;;  %v131_v20 = vld [vmem:[#allocation7 + $0x68] sm:$0xff]  ;;  %v132_v22 = vld [vmem:[#allocation7 + $0x70] sm:$0xff]  ;;  %v133_v23 = vld [vmem:[#allocation7 + $0x78] sm:$0xff] }
  0x60   :  { %v1327_v21 = vpack.c.bf16 %v131_v20, %v130_v19  ;;  %v1331_v24 = vpack.c.bf16 %v133_v23, %v132_v22  ;;  %v111_v25 = vld [vmem:[#allocation5 + $0x8] sm:$0xff]  ;;  %v112_v26 = vld [vmem:[#allocation5 + $0x10] sm:$0xff]  ;;  %v113_v27 = vld [vmem:[#allocation5 + $0x18] sm:$0xff] }
  0x61   :  { %v114_v28 = vld [vmem:[#allocation5 + $0x20] sm:$0xff]  ;;  %v115_v29 = vld [vmem:[#allocation5 + $0x28] sm:$0xff]  ;;  %v116_v30 = vld [vmem:[#allocation5 + $0x30] sm:$0xff] }
  0x62   :  { %1310 = vmatpush3.bf16.msra.mxu0 %v1307_v5  ;;  %v117_v31 = vld [vmem:[#allocation5 + $0x38] sm:$0xff]  ;;  %v1797_v32 = vld [vmem:[#allocation2] sm:$0xff]  ;;  %v393_v43 = vld [vmem:[#allocation8 + $0x8] sm:$0xff] }
  0x63   :  { %1312 = vmatprep.subr.bf16.mxu0 %v1311_v8  ;;  %1147 = vmatprep.mubr.msk.f32.mxu1 %vm246_vm0, %v1797_v32  ;;  %v392_v42 = vld [vmem:[#allocation8] sm:$0xff]  ;;  %v394_v48 = vld [vmem:[#allocation8 + $0x10] sm:$0xff]  ;;  %v395_v49 = vld [vmem:[#allocation8 + $0x18] sm:$0xff] }
  0x64   :  { %v1351_v47 = vpack.c.bf16 %v393_v43, %v392_v42  ;;  %v1803_v50 = vld [vmem:[#allocation2 + $0x8] sm:$0xff]  ;;  %v1805_v51 = vld [vmem:[#allocation2 + $0x10] sm:$0xff]  ;;  %v1355_v52 = vpack.c.bf16 %v395_v49, %v394_v48  ;;  %v396_v53 = vld [vmem:[#allocation8 + $0x20] sm:$0xff] }
  0x65   :  { %v397_v54 = vld [vmem:[#allocation8 + $0x28] sm:$0xff]  ;;  %v1811_v55 = vld [vmem:[#allocation2 + $0x18] sm:$0xff]  ;;  %v1813_v56 = vld [vmem:[#allocation2 + $0x20] sm:$0xff] }
  0x66   :  { %1314 = vmatpush3.bf16.msra.mxu0 %v1311_v8  ;;  %v1359_v57 = vpack.c.bf16 %v397_v54, %v396_v53  ;;  %v398_v58 = vld [vmem:[#allocation8 + $0x30] sm:$0xff]  ;;  %v399_v59 = vld [vmem:[#allocation8 + $0x38] sm:$0xff]  ;;  %v1819_v60 = vld [vmem:[#allocation2 + $0x28] sm:$0xff] }
  0x67   :  { %1316 = vmatprep.subr.bf16.mxu0 %v1315_v12  ;;  %v1821_v61 = vld [vmem:[#allocation2 + $0x30] sm:$0xff]  ;;  %v1363_v62 = vpack.c.bf16 %v399_v59, %v398_v58  ;;  %v400_v63 = vld [vmem:[#allocation8 + $0x40] sm:$0xff]  ;;  %v401_v0 = vld [vmem:[#allocation8 + $0x48] sm:$0xff] }
  0x68   :  { %v1827_v1 = vld [vmem:[#allocation2 + $0x38] sm:$0xff]  ;;  %v1367_v2 = vpack.c.bf16 %v401_v0, %v400_v63  ;;  %v402_v3 = vld [vmem:[#allocation8 + $0x50] sm:$0xff]  ;;  %v404_v6 = vld [vmem:[#allocation8 + $0x60] sm:$0xff] }
  0x69   :  { %v403_v4 = vld [vmem:[#allocation8 + $0x58] sm:$0xff]  ;;  %v405_v7 = vld [vmem:[#allocation8 + $0x68] sm:$0xff]  ;;  %v406_v9 = vld [vmem:[#allocation8 + $0x70] sm:$0xff] }
  0x6a   :  { %1318 = vmatpush3.bf16.msra.mxu0 %v1315_v12  ;;  %v1371_v5 = vpack.c.bf16 %v403_v4, %v402_v3  ;;  %v1375_v8 = vpack.c.bf16 %v405_v7, %v404_v6  ;;  %v407_v10 = vld [vmem:[#allocation8 + $0x78] sm:$0xff]  ;;  %v940_v12 = vld [vmem:[%s1920_s5] ss:$0 sm:$0xff]  ;;  %v642_v48 = vld [vmem:[#allocation10 + $0x8] sm:$0xff] }
  0x6b   :  { %1320 = vmatprep.subr.bf16.mxu0 %v1319_v15  ;;  %v1379_v11 = vpack.c.bf16 %v407_v10, %v406_v9  ;;  %v643_v54 = vld [vmem:[#allocation10 + $0x10] sm:$0xff]  ;;  %v645_v59 = vld [vmem:[#allocation10 + $0x20] sm:$0xff] }
  0x6c   :  { %v647_v0 = vld [vmem:[#allocation10 + $0x30] sm:$0xff]  ;;  %v649_v4 = vld [vmem:[#allocation10 + $0x40] sm:$0xff] }
  0x6d   :  { %v651_v7 = vld [vmem:[#allocation10 + $0x50] sm:$0xff]  ;;  %v653_v10 = vld [vmem:[#allocation10 + $0x60] sm:$0xff] }
  0x6e   :  { %1322 = vmatpush3.bf16.msra.mxu0 %v1319_v15 }
  0x6f   :  { %1324 = vmatprep.subr.bf16.mxu0 %v1323_v18 }
  0x72   :  { %1326 = vmatpush3.bf16.msra.mxu0 %v1323_v18 }
  0x73   :  { %1328 = vmatprep.subr.bf16.mxu0 %v1327_v21 }
  0x76   :  { %1330 = vmatpush3.bf16.msra.mxu0 %v1327_v21 }
  0x77   :  { %1332 = vmatprep.subr.bf16.mxu0 %v1331_v24 }
  0x7a   :  { %1334 = vmatpush3.bf16.msra.mxu0 %v1331_v24 }
  0x7d   :  { %1120 = vmatmul.mubr.f32.vlgmr.msra.gmra.mrb[0].mxu0 %v111_v25 }
  0x7e   :  { %1122 = vmatprep.mubr.f32.mxu0 %v112_v26 }
  0x81   :  { %1123 = vmatmul.mubr.f32.gmra.mrb[2].mxu0 %v113_v27 }
  0x82   :  { %1125 = vmatprep.mubr.f32.mxu0 %v114_v28 }
  0x85   :  { %1126 = vmatmul.mubr.f32.gmra.mrb[4].mxu0 %v115_v29 }
  0x86   :  { %1128 = vmatprep.mubr.f32.mxu0 %v116_v30 }
  0x89   :  { %1129 = vmatmul.mubr.f32.gmra.mrb[6].mxu0 %v117_v31 }
  0x8a   :  { %1219 = vmatprep.mubr.msk.f32.mxu0 %vm246_vm0, %v1797_v32 }
 0x150   :  { %v1121_v33 = vpop.f32.mrb[0].mxu0 }
 0x151   :  { %v200_v34 = vpop.f32.mrb[1].mxu0 }
 0x152   :  { %v1335_v35 = vpack.c.bf16 %v1121_v33, %v200_v34 }
 0x154   :  { %v1124_v36 = vpop.f32.mrb[2].mxu0  ;;  %1336 = vmatprep.subr.bf16.mxu1 %v1335_v35 }
 0x155   :  { %v210_v37 = vpop.f32.mrb[3].mxu0  ;;  %1338 = vmatpush3.bf16.msra.mxu1 %v1335_v35 }
 0x156   :  { %v1339_v38 = vpack.c.bf16 %v1124_v36, %v210_v37 }
 0x158   :  { %v1127_v39 = vpop.f32.mrb[4].mxu0  ;;  %1340 = vmatprep.subr.bf16.mxu1 %v1339_v38 }
 0x159   :  { %v220_v40 = vpop.f32.mrb[5].mxu0  ;;  %1342 = vmatpush3.bf16.msra.mxu1 %v1339_v38 }
 0x15a   :  { %v1343_v41 = vpack.c.bf16 %v1127_v39, %v220_v40 }
 0x15c   :  { %v1130_v44 = vpop.f32.mrb[6].mxu0  ;;  %1344 = vmatprep.subr.bf16.mxu1 %v1343_v41 }
 0x15d   :  { %v230_v45 = vpop.f32.mrb[7].mxu0  ;;  %1346 = vmatpush3.bf16.msra.mxu1 %v1343_v41 }
 0x15e   :  { %v1347_v46 = vpack.c.bf16 %v1130_v44, %v230_v45 }
 0x160   :  { %1348 = vmatprep.subr.bf16.mxu1 %v1347_v46 }
 0x161   :  { %1350 = vmatpush3.bf16.msra.mxu1 %v1347_v46 }
 0x162   :  { %1352 = vmatprep.subr.bf16.mxu1 %v1351_v47 }
 0x164   :  { %1148 = vmatmul.mubr.msk.f32.vlgmr.msra.gmra.mrb[0].mxu1 %vm246_vm0, %v1803_v50 }
 0x165   :  { %1150 = vmatprep.mubr.msk.f32.mxu1 %vm246_vm0, %v1805_v51  ;;  %1354 = vmatpush3.bf16.msra.mxu1 %v1351_v47  ;;  %v641_v47 = vld [vmem:[#allocation10] sm:$0xff] }
 0x166   :  { %1356 = vmatprep.subr.bf16.mxu1 %v1355_v52  ;;  %v1399_v53 = vpack.c.bf16 %v642_v48, %v641_v47 }
 0x168   :  { %1151 = vmatmul.mubr.msk.f32.gmra.mrb[2].mxu1 %vm246_vm0, %v1811_v55 }
 0x169   :  { %1153 = vmatprep.mubr.msk.f32.mxu1 %vm246_vm0, %v1813_v56  ;;  %1358 = vmatpush3.bf16.msra.mxu1 %v1355_v52 }
 0x16a   :  { %1360 = vmatprep.subr.bf16.mxu1 %v1359_v57 }
 0x16c   :  { %1154 = vmatmul.mubr.msk.f32.gmra.mrb[4].mxu1 %vm246_vm0, %v1819_v60 }
 0x16d   :  { %1156 = vmatprep.mubr.msk.f32.mxu1 %vm246_vm0, %v1821_v61  ;;  %1362 = vmatpush3.bf16.msra.mxu1 %v1359_v57  ;;  %v644_v57 = vld [vmem:[#allocation10 + $0x18] sm:$0xff] }
 0x16e   :  { %1364 = vmatprep.subr.bf16.mxu1 %v1363_v62  ;;  %v1403_v58 = vpack.c.bf16 %v644_v57, %v643_v54 }
 0x170   :  { %1157 = vmatmul.mubr.msk.f32.gmra.mrb[6].mxu1 %vm246_vm0, %v1827_v1 }
 0x171   :  { %1366 = vmatpush3.bf16.msra.mxu1 %v1363_v62  ;;  %v646_v62 = vld [vmem:[#allocation10 + $0x28] sm:$0xff] }
 0x172   :  { %1368 = vmatprep.subr.bf16.mxu1 %v1367_v2  ;;  %v1407_v63 = vpack.c.bf16 %v646_v62, %v645_v59 }
 0x175   :  { %1370 = vmatpush3.bf16.msra.mxu1 %v1367_v2  ;;  %v648_v2 = vld [vmem:[#allocation10 + $0x38] sm:$0xff] }
 0x176   :  { %1372 = vmatprep.subr.bf16.mxu1 %v1371_v5  ;;  %v1411_v3 = vpack.c.bf16 %v648_v2, %v647_v0 }
 0x179   :  { %1374 = vmatpush3.bf16.msra.mxu1 %v1371_v5  ;;  %v650_v5 = vld [vmem:[#allocation10 + $0x48] sm:$0xff] }
 0x17a   :  { %1376 = vmatprep.subr.bf16.mxu1 %v1375_v8  ;;  %v1415_v6 = vpack.c.bf16 %v650_v5, %v649_v4 }
 0x17d   :  { %1378 = vmatpush3.bf16.msra.mxu1 %v1375_v8  ;;  %v652_v8 = vld [vmem:[#allocation10 + $0x58] sm:$0xff] }
 0x17e   :  { %1380 = vmatprep.subr.bf16.mxu1 %v1379_v11  ;;  %v1419_v9 = vpack.c.bf16 %v652_v8, %v651_v7 }
 0x181   :  { %1382 = vmatpush3.bf16.msra.mxu1 %v1379_v11  ;;  %v654_v11 = vld [vmem:[#allocation10 + $0x68] sm:$0xff] }
 0x237   :  { %v1149_v13 = vpop.f32.mrb[0].mxu1 }
 0x238   :  { %v343_v14 = vadd.f32 %v1149_v13, %v940_v12  ;;  %v337_v15 = vpop.f32.mrb[1].mxu1  ;;  %v655_v13 = vld [vmem:[#allocation10 + $0x70] sm:$0xff] }
 0x239   :  { %v338_v16 = vadd.f32 %v940_v12, %v337_v15 }
 0x23a   :  { %v377_v17 = vmax.f32 %v343_v14, 0.0  ;;  %v656_v14 = vld [vmem:[#allocation10 + $0x78] sm:$0xff] }
 0x23b   :  { %v376_v18 = vmax.f32 %v338_v16, 0.0  ;;  %v1152_v19 = vpop.f32.mrb[2].mxu1  ;;  %v1427_v15 = vpack.c.bf16 %v656_v14, %v655_v13  ;;  %v949_v16 = vld [vmem:[%s1921_s6] ss:$0 sm:$0xff]  ;;  %s1650_s6 = smov [#allocation12]  }
 0x23c   :  { %385 = vst [vmem:[#allocation11 + $0x8] sm:$0xff] %v377_v17  ;;  %v353_v20 = vadd.f32 %v1152_v19, %v940_v12  ;;  %v347_v21 = vpop.f32.mrb[3].mxu1  ;;  %s907_s17 = sshll.u32 %s1650_s6, 4  ;;  %s908_s17 = int_to_ptr.vmem [resolvable:$true] %s907_s17 }
 0x23d   :  { %384 = vst [vmem:[#allocation11] sm:$0xff] %v376_v18  ;;  %v348_v22 = vadd.f32 %v940_v12, %v347_v21  ;;  %1191 = vmatprep.mubr.f32.mxu1 %v376_v18  ;;  %s1567_s14 = scalar_lea.vmem %s908_s17, 1024  ;;  %p1572_p13 = scmp.lt.s32.totalorder %s908_s17, %s908_s17 }
 0x23e   :  { %v379_v23 = vmax.f32 %v353_v20, 0.0  ;;  %1192 = vmatmul.mubr.f32.vlgmr.msra.gmra.mrb[8].mxu1 %v377_v17  ;;  %p1568_p12 = scmp.ne.s32.totalorder %s908_s17, %s1567_s14  ;;  %p1573_p0 = scmp.lt.s32.totalorder %s1567_s14, %s1567_s14 }
 0x23f   :  { %v378_v24 = vmax.f32 %v348_v22, 0.0  ;;  %v1155_v25 = vpop.f32.mrb[4].mxu1 }
 0x240   :  { %387 = vst [vmem:[#allocation11 + $0x18] sm:$0xff] %v379_v23  ;;  %v363_v26 = vadd.f32 %v1155_v25, %v940_v12  ;;  %v357_v27 = vpop.f32.mrb[5].mxu1  ;;  %p1574_p1 = por %p1573_p0, %p1572_p13 }
 0x241   :  { %386 = vst [vmem:[#allocation11 + $0x10] sm:$0xff] %v378_v24  ;;  %v358_v28 = vadd.f32 %v940_v12, %v357_v27  ;;  %1194 = vmatprep.mubr.f32.mxu1 %v378_v24 }
 0x242   :  { %v381_v29 = vmax.f32 %v363_v26, 0.0  ;;  %1195 = vmatmul.mubr.f32.gmra.mrb[10].mxu1 %v379_v23  ;;  %p1575_p2 = pnand %p1574_p1, %p1568_p12 }
 0x243   :  { %v380_v30 = vmax.f32 %v358_v28, 0.0  ;;  %v1158_v31 = vpop.f32.mrb[6].mxu1 }
 0x244   :  { %389 = vst [vmem:[#allocation11 + $0x28] sm:$0xff] %v381_v29  ;;  %v373_v33 = vadd.f32 %v1158_v31, %v940_v12  ;;  %v367_v34 = vpop.f32.mrb[7].mxu1 }
 0x245   :  { %388 = vst [vmem:[#allocation11 + $0x20] sm:$0xff] %v380_v30  ;;  %v368_v35 = vadd.f32 %v940_v12, %v367_v34  ;;  %1197 = vmatprep.mubr.f32.mxu1 %v380_v30  ;;  %v1423_v12 = vpack.c.bf16 %v654_v11, %v653_v10 }
 0x246   :  { %v383_v36 = vmax.f32 %v373_v33, 0.0  ;;  %1198 = vmatmul.mubr.f32.gmra.mrb[12].mxu1 %v381_v29 }
 0x247   :  { %v382_v37 = vmax.f32 %v368_v35, 0.0 }
 0x248   :  { %391 = vst [vmem:[#allocation11 + $0x38] sm:$0xff] %v383_v36 }
 0x249   :  { %390 = vst [vmem:[#allocation11 + $0x30] sm:$0xff] %v382_v37  ;;  %1200 = vmatprep.mubr.f32.mxu1 %v382_v37 }
 0x24a   :  { %1201 = vmatmul.mubr.f32.gmra.mrb[14].mxu1 %v383_v36 }
 0x24b   :  { %1291 = vmatprep.mubr.msk.f32.mxu1 %vm246_vm0, %v1797_v32 }
 0x311   :  { %v1193_v38 = vpop.f32.mrb[8].mxu1 }
 0x312   :  { %v474_v39 = vpop.f32.mrb[9].mxu1 }
 0x313   :  { %v1383_v40 = vpack.c.bf16 %v1193_v38, %v474_v39 }
 0x315   :  { %v1196_v41 = vpop.f32.mrb[10].mxu1  ;;  %1384 = vmatprep.subr.bf16.mxu0 %v1383_v40 }
 0x316   :  { %v484_v42 = vpop.f32.mrb[11].mxu1  ;;  %1386 = vmatpush3.bf16.msra.mxu0 %v1383_v40 }
 0x317   :  { %v1387_v43 = vpack.c.bf16 %v1196_v41, %v484_v42 }
 0x319   :  { %v1199_v44 = vpop.f32.mrb[12].mxu1  ;;  %1388 = vmatprep.subr.bf16.mxu0 %v1387_v43 }
 0x31a   :  { %v494_v45 = vpop.f32.mrb[13].mxu1  ;;  %1390 = vmatpush3.bf16.msra.mxu0 %v1387_v43 }
 0x31b   :  { %v1391_v46 = vpack.c.bf16 %v1199_v44, %v494_v45 }
 0x31d   :  { %v1202_v49 = vpop.f32.mrb[14].mxu1  ;;  %1392 = vmatprep.subr.bf16.mxu0 %v1391_v46 }
 0x31e   :  { %v504_v52 = vpop.f32.mrb[15].mxu1  ;;  %1394 = vmatpush3.bf16.msra.mxu0 %v1391_v46 }
 0x31f   :  { %v1395_v32 = vpack.c.bf16 %v1202_v49, %v504_v52 }
 0x321   :  { %1396 = vmatprep.subr.bf16.mxu0 %v1395_v32 }
 0x322   :  { %1398 = vmatpush3.bf16.msra.mxu0 %v1395_v32 }
 0x323   :  { %1400 = vmatprep.subr.bf16.mxu0 %v1399_v53 }
 0x325   :  { %1220 = vmatmul.mubr.msk.f32.vlgmr.msra.gmra.mrb[8].mxu0 %vm246_vm0, %v1803_v50 }
 0x326   :  { %1222 = vmatprep.mubr.msk.f32.mxu0 %vm246_vm0, %v1805_v51  ;;  %1402 = vmatpush3.bf16.msra.mxu0 %v1399_v53 }
 0x327   :  { %1404 = vmatprep.subr.bf16.mxu0 %v1403_v58 }
 0x329   :  { %1223 = vmatmul.mubr.msk.f32.gmra.mrb[10].mxu0 %vm246_vm0, %v1811_v55 }
 0x32a   :  { %1225 = vmatprep.mubr.msk.f32.mxu0 %vm246_vm0, %v1813_v56  ;;  %1406 = vmatpush3.bf16.msra.mxu0 %v1403_v58 }
 0x32b   :  { %1408 = vmatprep.subr.bf16.mxu0 %v1407_v63 }
 0x32d   :  { %1226 = vmatmul.mubr.msk.f32.gmra.mrb[12].mxu0 %vm246_vm0, %v1819_v60 }
 0x32e   :  { %1228 = vmatprep.mubr.msk.f32.mxu0 %vm246_vm0, %v1821_v61  ;;  %1410 = vmatpush3.bf16.msra.mxu0 %v1407_v63 }
 0x32f   :  { %1412 = vmatprep.subr.bf16.mxu0 %v1411_v3 }
 0x331   :  { %1229 = vmatmul.mubr.msk.f32.gmra.mrb[14].mxu0 %vm246_vm0, %v1827_v1 }
 0x332   :  { %1414 = vmatpush3.bf16.msra.mxu0 %v1411_v3 }
 0x333   :  { %1416 = vmatprep.subr.bf16.mxu0 %v1415_v6 }
 0x336   :  { %1418 = vmatpush3.bf16.msra.mxu0 %v1415_v6 }
 0x337   :  { %1420 = vmatprep.subr.bf16.mxu0 %v1419_v9 }
 0x33a   :  { %1422 = vmatpush3.bf16.msra.mxu0 %v1419_v9 }
 0x33b   :  { %1424 = vmatprep.subr.bf16.mxu0 %v1423_v12 }
 0x33e   :  { %1426 = vmatpush3.bf16.msra.mxu0 %v1423_v12 }
 0x33f   :  { %1428 = vmatprep.subr.bf16.mxu0 %v1427_v15 }
 0x342   :  { %1430 = vmatpush3.bf16.msra.mxu0 %v1427_v15 }
 0x3f8   :  { %v1221_v17 = vpop.f32.mrb[8].mxu0 }
 0x3f9   :  { %v592_v18 = vadd.f32 %v1221_v17, %v949_v16  ;;  %v586_v19 = vpop.f32.mrb[9].mxu0 }
 0x3fa   :  { %v587_v20 = vadd.f32 %v949_v16, %v586_v19 }
 0x3fb   :  { %v626_v21 = vmax.f32 %v592_v18, 0.0 }
 0x3fc   :  { %v625_v22 = vmax.f32 %v587_v20, 0.0  ;;  %v1224_v23 = vpop.f32.mrb[10].mxu0 }
 0x3fd   :  { %634 = vst [vmem:[#allocation12 + $0x8] sm:$0xff] %v626_v21  ;;  %v602_v24 = vadd.f32 %v1224_v23, %v949_v16  ;;  %v596_v25 = vpop.f32.mrb[11].mxu0 }
 0x3fe   :  { %633 = vst [vmem:[#allocation12] sm:$0xff] %v625_v22  ;;  %v597_v26 = vadd.f32 %v949_v16, %v596_v25  ;;  %1263 = vmatprep.mubr.f32.mxu0 %v625_v22 }
 0x3ff   :  { %v628_v27 = vmax.f32 %v602_v24, 0.0  ;;  %1264 = vmatmul.mubr.f32.vlgmr.msra.gmra.mrb[16].mxu0 %v626_v21 }
 0x400   :  { %v627_v28 = vmax.f32 %v597_v26, 0.0  ;;  %v1227_v29 = vpop.f32.mrb[12].mxu0 }
 0x401   :  { %636 = vst [vmem:[#allocation12 + $0x18] sm:$0xff] %v628_v27  ;;  %v612_v30 = vadd.f32 %v1227_v29, %v949_v16  ;;  %v606_v31 = vpop.f32.mrb[13].mxu0 }
 0x402   :  { %635 = vst [vmem:[#allocation12 + $0x10] sm:$0xff] %v627_v28  ;;  %v607_v33 = vadd.f32 %v949_v16, %v606_v31  ;;  %1266 = vmatprep.mubr.f32.mxu0 %v627_v28 }
 0x403   :  { %v630_v34 = vmax.f32 %v612_v30, 0.0  ;;  %1267 = vmatmul.mubr.f32.gmra.mrb[18].mxu0 %v628_v27 }
 0x404   :  { %v629_v35 = vmax.f32 %v607_v33, 0.0  ;;  %v1230_v36 = vpop.f32.mrb[14].mxu0 }
 0x405   :  { %638 = vst [vmem:[#allocation12 + $0x28] sm:$0xff] %v630_v34  ;;  %v622_v37 = vadd.f32 %v1230_v36, %v949_v16  ;;  %v616_v38 = vpop.f32.mrb[15].mxu0 }
 0x406   :  { %637 = vst [vmem:[#allocation12 + $0x20] sm:$0xff] %v629_v35  ;;  %v617_v39 = vadd.f32 %v949_v16, %v616_v38  ;;  %1269 = vmatprep.mubr.f32.mxu0 %v629_v35 }
 0x407   :  { %v632_v40 = vmax.f32 %v622_v37, 0.0  ;;  %1270 = vmatmul.mubr.f32.gmra.mrb[20].mxu0 %v630_v34 }
 0x408   :  { %v631_v41 = vmax.f32 %v617_v39, 0.0 }
 0x409   :  { %640 = vst [vmem:[#allocation12 + $0x38] sm:$0xff] %v632_v40 }
 0x40a   :  { %639 = vst [vmem:[#allocation12 + $0x30] sm:$0xff] %v631_v41  ;;  %1272 = vmatprep.mubr.f32.mxu0 %v631_v41 }
 0x40b   :  { %1273 = vmatmul.mubr.f32.gmra.mrb[22].mxu0 %v632_v40 }
 0x4d2   :  { %v1265_v42 = vpop.f32.mrb[16].mxu0 }
 0x4d3   :  { %v723_v43 = vpop.f32.mrb[17].mxu0 }
 0x4d4   :  { %v1431_v44 = vpack.c.bf16 %v1265_v42, %v723_v43 }
 0x4d6   :  { %v1268_v45 = vpop.f32.mrb[18].mxu0  ;;  %1432 = vmatprep.subr.bf16.mxu1 %v1431_v44 }
 0x4d7   :  { %v733_v46 = vpop.f32.mrb[19].mxu0  ;;  %1434 = vmatpush3.bf16.msra.mxu1 %v1431_v44 }
 0x4d8   :  { %v1435_v47 = vpack.c.bf16 %v1268_v45, %v733_v46 }
 0x4da   :  { %v1271_v48 = vpop.f32.mrb[20].mxu0  ;;  %1436 = vmatprep.subr.bf16.mxu1 %v1435_v47 }
 0x4db   :  { %v743_v49 = vpop.f32.mrb[21].mxu0  ;;  %1438 = vmatpush3.bf16.msra.mxu1 %v1435_v47 }
 0x4dc   :  { %v1439_v52 = vpack.c.bf16 %v1271_v48, %v743_v49 }
 0x4de   :  { %v1274_v32 = vpop.f32.mrb[22].mxu0  ;;  %1440 = vmatprep.subr.bf16.mxu1 %v1439_v52 }
 0x4df   :  { %v753_v53 = vpop.f32.mrb[23].mxu0  ;;  %1442 = vmatpush3.bf16.msra.mxu1 %v1439_v52 }
 0x4e0   :  { %v1443_v54 = vpack.c.bf16 %v1274_v32, %v753_v53 }
 0x4e2   :  { %1444 = vmatprep.subr.bf16.mxu1 %v1443_v54 }
 0x4e3   :  { %1446 = vmatpush3.bf16.msra.mxu1 %v1443_v54 }
 0x4e6   :  { %1292 = vmatmul.mubr.msk.f32.vlgmr.msra.gmra.mrb[16].mxu1 %vm246_vm0, %v1803_v50 }
 0x4e7   :  { %1294 = vmatprep.mubr.msk.f32.mxu1 %vm246_vm0, %v1805_v51 }
 0x4ea   :  { %1295 = vmatmul.mubr.msk.f32.gmra.mrb[18].mxu1 %vm246_vm0, %v1811_v55 }
 0x4eb   :  { %1297 = vmatprep.mubr.msk.f32.mxu1 %vm246_vm0, %v1813_v56 }
 0x4ee   :  { %1298 = vmatmul.mubr.msk.f32.gmra.mrb[20].mxu1 %vm246_vm0, %v1819_v60 }
 0x4ef   :  { %1300 = vmatprep.mubr.msk.f32.mxu1 %vm246_vm0, %v1821_v61 }
 0x4f2   :  { %1301 = vmatmul.mubr.msk.f32.gmra.mrb[22].mxu1 %vm246_vm0, %v1827_v1 }
 0x4f3   :  { %1578 = shalt.err (!%p1575_p2)
}
 0x4f4   :  { %s1579_s0 = scalar_lea.hbm %s1924_s9, 1024 }
 0x4f5   :  { %p1580_p3 = scmp.ne.s32.totalorder %s1924_s9, %s1579_s0  ;;  %p1583_p4 = scmp.lt.u32.totalorder %s1579_s0, %s1924_s9 }
 0x4f7   :  { %p1585_p5 = pnand %p1583_p4, %p1580_p3 }
 0x4f9   :  { %1588 = shalt.err (!%p1585_p5)
}
 0x4fa   :  { %913 = dma.vmem_to_hbm [thread:$0]  %s908_s17, 1024, %s1924_s9, [#allocation13], %s1645_s25, %s1645_s25, %s1646_s26  }
 0x4fb   :  { %s1589_s30 = scalar_lea.vmem %s896_s1, 1024  ;;  %p1594_p7 = scmp.lt.s32.totalorder %s896_s1, %s896_s1 }
 0x4fc   :  { %p1590_p6 = scmp.ne.s32.totalorder %s896_s1, %s1589_s30  ;;  %p1595_p8 = scmp.lt.s32.totalorder %s1589_s30, %s1589_s30 }
 0x4fe   :  { %p1596_p9 = por %p1595_p8, %p1594_p7 }
 0x500   :  { %p1597_p10 = pnand %p1596_p9, %p1590_p6 }
 0x502   :  { %1600 = shalt.err (!%p1597_p10)
}
 0x503   :  { %s1601_s16 = scalar_lea.hbm %s1923_s8, 1024 }
 0x504   :  { %p1602_p11 = scmp.ne.s32.totalorder %s1923_s8, %s1601_s16  ;;  %p1605_p12 = scmp.lt.u32.totalorder %s1601_s16, %s1923_s8 }
 0x506   :  { %p1607_p13 = pnand %p1605_p12, %p1602_p11 }
 0x508   :  { %1610 = shalt.err (!%p1607_p13)
}
 0x509   :  { %901 = dma.vmem_to_hbm [thread:$0]  %s896_s1, 1024, %s1923_s8, [#allocation4], %s1645_s25, %s1645_s25, %s1646_s26  }
 0x50a   :  { %v958_v50 = vld [vmem:[%s1922_s7] ss:$0 sm:$0xff]  ;;  %s1652_s7 = smov [#allocation14]  }
 0x50b   :  { %s919_s8 = sshll.u32 %s1652_s7, 4  ;;  %s920_s8 = int_to_ptr.vmem [resolvable:$true] %s919_s8 }
 0x50c   :  { %s1611_s6 = scalar_lea.vmem %s920_s8, 1024  ;;  %p1616_p1 = scmp.lt.s32.totalorder %s920_s8, %s920_s8 }
 0x50d   :  { %p1612_p0 = scmp.ne.s32.totalorder %s920_s8, %s1611_s6  ;;  %p1617_p2 = scmp.lt.s32.totalorder %s1611_s6, %s1611_s6 }
 0x50f   :  { %p1618_p3 = por %p1617_p2, %p1616_p1 }
 0x511   :  { %p1619_p4 = pnand %p1618_p3, %p1612_p0 }
 0x5b9   :  { %v1293_v51 = vpop.f32.mrb[16].mxu1 }
 0x5ba   :  { %v841_v55 = vadd.f32 %v1293_v51, %v958_v50  ;;  %v835_v56 = vpop.f32.mrb[17].mxu1 }
 0x5bb   :  { %v836_v60 = vadd.f32 %v958_v50, %v835_v56 }
 0x5bc   :  { %v875_v61 = vmax.f32 %v841_v55, 0.0 }
 0x5bd   :  { %v874_v1 = vmax.f32 %v836_v60, 0.0  ;;  %v1296_v57 = vpop.f32.mrb[18].mxu1 }
 0x5be   :  { %883 = vst [vmem:[#allocation14 + $0x8] sm:$0xff] %v875_v61  ;;  %v851_v58 = vadd.f32 %v1296_v57, %v958_v50  ;;  %v845_v59 = vpop.f32.mrb[19].mxu1 }
 0x5bf   :  { %882 = vst [vmem:[#allocation14] sm:$0xff] %v874_v1  ;;  %v846_v62 = vadd.f32 %v958_v50, %v845_v59 }
 0x5c0   :  { %v877_v63 = vmax.f32 %v851_v58, 0.0 }
 0x5c1   :  { %v876_v0 = vmax.f32 %v846_v62, 0.0  ;;  %v1299_v2 = vpop.f32.mrb[20].mxu1 }
 0x5c2   :  { %885 = vst [vmem:[#allocation14 + $0x18] sm:$0xff] %v877_v63  ;;  %v861_v3 = vadd.f32 %v1299_v2, %v958_v50  ;;  %v855_v4 = vpop.f32.mrb[21].mxu1 }
 0x5c3   :  { %884 = vst [vmem:[#allocation14 + $0x10] sm:$0xff] %v876_v0  ;;  %v856_v5 = vadd.f32 %v958_v50, %v855_v4 }
 0x5c4   :  { %v879_v6 = vmax.f32 %v861_v3, 0.0 }
 0x5c5   :  { %v878_v7 = vmax.f32 %v856_v5, 0.0  ;;  %v1302_v8 = vpop.f32.mrb[22].mxu1 }
 0x5c6   :  { %887 = vst [vmem:[#allocation14 + $0x28] sm:$0xff] %v879_v6  ;;  %v871_v9 = vadd.f32 %v1302_v8, %v958_v50  ;;  %v865_v10 = vpop.f32.mrb[23].mxu1 }
 0x5c7   :  { %886 = vst [vmem:[#allocation14 + $0x20] sm:$0xff] %v878_v7  ;;  %v866_v11 = vadd.f32 %v958_v50, %v865_v10 }
 0x5c8   :  { %v881_v12 = vmax.f32 %v871_v9, 0.0 }
 0x5c9   :  { %v880_v13 = vmax.f32 %v866_v11, 0.0 }
 0x5ca   :  { %889 = vst [vmem:[#allocation14 + $0x38] sm:$0xff] %v881_v12 }
 0x5cb   :  { %888 = vst [vmem:[#allocation14 + $0x30] sm:$0xff] %v880_v13 }
 0x5cc   :  { %1622 = shalt.err (!%p1619_p4)
}
 0x5cd   :  { %s1623_s1 = scalar_lea.hbm %s1925_s10, 1024 }
 0x5ce   :  { %p1624_p5 = scmp.ne.s32.totalorder %s1925_s10, %s1623_s1  ;;  %p1627_p6 = scmp.lt.u32.totalorder %s1623_s1, %s1925_s10 }
 0x5d0   :  { %p1629_p7 = pnand %p1627_p6, %p1624_p5 }
 0x5d2   :  { %1632 = shalt.err (!%p1629_p7)
}
 0x5d3   :  { %925 = dma.vmem_to_hbm [thread:$0]  %s920_s8, 1024, %s1925_s10, [#allocation13], %s1645_s25, %s1645_s25, %s1646_s26  }
 0x5d4   :  { %1639 = dma.done.wait [#allocation4], 1024  }
 0x5d5   :  { %1640 = vsyncadd [#allocation4], 4294966272 }
 0x5d6   :  { %1641 = dma.done.wait [#allocation13], 2048  }
 0x5d7   :  { %1642 = vsyncadd [#allocation13], 4294965248 }
 0x5d8   :  { %935 = vsyncpa [#allocation3], 1 }
 0x5d9   :  { %936 = vsyncpa [#allocation6], 1 }
 0x5da   :  { %937 = vsyncpa [#allocation9], 1 }
 0x5db   :  { %938 = vsyncpa [#allocation4], 1 }
 0x5dc   :  { %939 = vsyncpa [#allocation13], 1 }

</bundles_post_ra>
